<compile_context>
chip_gen: v5e
topology: v5e:2x2
jax: 0.10.0
libtpu: 0.0.40
codegen_flags: <defaults>
</compile_context>

<pallas_src>
import functools

import jax
import jax.numpy as jnp
from jax.experimental import pallas as pl
from jax.experimental.pallas import tpu as pltpu


# ----------------------------------------------------------------------------- tiling ---
def _choose_tiles(rows: int, hw: int, itemsize: int, row_pack: int,
                  per_buffer_bytes: int, max_hw_tile: int):
    """Pick (block_rows, hw_tile).

    Budget counts both the input block and the 128-lane-padded output block, so total
    double-buffered VMEM stays ~2 * per_buffer_bytes.
    """
    elem_budget = per_buffer_bytes // itemsize

    # Prefer a full-extent spatial block whenever at least one packed row group fits;
    # this removes the reduction grid axis, accumulators and all masking.
    if hw <= max_hw_tile or (elem_budget // (hw + 128)) >= row_pack:
        hw_tile = hw
    else:
        hw_tile = max_hw_tile          # multiple of 128 by construction

    cap = max(row_pack, (elem_budget // (hw_tile + 128)) // row_pack * row_pack)

    if rows <= cap:
        block_rows = rows
        # Megacore (v7x) split: guarantee >= 2 row blocks when rows allow it.
        if rows >= 2 * row_pack:
            half = -(-rows // 2)                                   # ceil(rows / 2)
            half = ((half + row_pack - 1) // row_pack) * row_pack  # round up to packing
            if half < rows:
                block_rows = half
    else:
        block_rows = cap
    return block_rows, hw_tile


# --------------------------------------------------------------------------- kernels ----
def _hpp_single_kernel(x_ref, o_ref, *, use_avg: bool, use_max: bool, inv_hw: float):
    """One full-width spatial block per row block: reduce and store directly."""
    x = x_ref[...]                                  # (block_rows, hw), native dtype
    res = None
    if use_avg:
        res = jnp.sum(x, axis=-1, keepdims=True, dtype=jnp.float32) * inv_hw
    if use_max:
        m = jnp.max(x, axis=-1, keepdims=True).astype(jnp.float32)
        res = m if res is None else res + m
    o_ref[...] = res.astype(o_ref.dtype)


def _lane_group_reduce(x, op, n_groups: int, lane_limit=None, fill=None):
    """Reduce (block_rows, n_groups*128) -> (block_rows, 128) in f32 with VPU ops only.

    Static 128-lane slices align with vreg columns (no relayout).  When `lane_limit`
    is given (tail tile only), lanes >= lane_limit are replaced by `fill` in f32, so
    -inf never has to be represented in the input dtype.
    """
    acc = None
    for g in range(n_groups):
        s = x[:, g * 128:(g + 1) * 128].astype(jnp.float32)
        if lane_limit is not None:
            col = jax.lax.broadcasted_iota(jnp.int32, s.shape, 1) + g * 128
            s = jnp.where(col < lane_limit, s, fill)
        acc = s if acc is None else op(acc, s)
    return acc


def _hpp_tiled_kernel(x_ref, o_ref, *accs, use_avg: bool, use_max: bool,
                      hw: int, hw_tile: int, mask_last: bool):
    """Streaming reduction over a 2-D grid with lane-wide f32 partial accumulators."""
    sum_acc = accs[0] if use_avg else None
    max_acc = accs[-1] if use_max else None
    n_groups = hw_tile // 128

    j = pl.program_id(1)
    last = pl.num_programs(1) - 1

    @pl.when(j == 0)
    def _init():
        if use_avg:
            sum_acc[...] = jnp.zeros_like(sum_acc)
        if use_max:
            max_acc[...] = jnp.full_like(max_acc, -jnp.inf)

    x = x_ref[...]                                  # (block_rows, hw_tile)

    def _accumulate(lane_limit):
        if use_avg:
            part = _lane_group_reduce(x, jnp.add, n_groups,
                                      lane_limit=lane_limit, fill=jnp.float32(0.0))
            sum_acc[...] += part
        if use_max:
            part = _lane_group_reduce(x, jnp.maximum, n_groups,
                                      lane_limit=lane_limit, fill=-jnp.inf)
            max_acc[...] = jnp.maximum(max_acc[...], part)

    if mask_last:
        # Unmasked hot loop; masking only on the (cold) tail tile.
        @pl.when(j < last)
        def _hot():
            _accumulate(None)

        @pl.when(j == last)
        def _tail():
            _accumulate(hw - j * hw_tile)
    else:
        _accumulate(None)

    @pl.when(j == last)
    def _finalize():
        res = None
        if use_avg:
            res = jnp.sum(sum_acc[...], axis=-1, keepdims=True) * (1.0 / hw)
        if use_max:
            m = jnp.max(max_acc[...], axis=-1, keepdims=True)
            res = m if res is None else res + m
        o_ref[...] = res.astype(o_ref.dtype)


# ---------------------------------------------------------------------------- wrapper ---
def horizontal_pyramid_pooling(x, use_avg_pool: bool = True, use_max_pool: bool = False,
                               *, per_buffer_bytes: int = 8 * 1024 * 1024,
                               max_hw_tile: int = 32768):
    """Equivalent of HorizontalPyramidPooling.forward for NCHW input -> (N, C, 1, 1)."""
    assert use_avg_pool or use_max_pool, "Pooling layer(s) required."
    assert max_hw_tile % 128 == 0

    N, C, H, W = x.shape
    rows, hw = N * C, H * W
    xf = x.reshape(rows, hw)

    itemsize = jnp.dtype(x.dtype).itemsize
    row_pack = max(8, 32 // itemsize)        # sublane packing: 8 f32, 16 bf16, 32 int8/fp8
    block_rows, hw_tile = _choose_tiles(rows, hw, itemsize, row_pack,
                                        per_buffer_bytes, max_hw_tile)
    n_row_blocks = pl.cdiv(rows, block_rows)
    compiler_params_kw = dict(vmem_limit_bytes=40 * 1024 * 1024)

    if hw_tile == hw:
        # Fast path: single full-extent spatial block, no accumulators / masking.
        kernel = functools.partial(_hpp_single_kernel, use_avg=use_avg_pool,
                                   use_max=use_max_pool, inv_hw=1.0 / hw)
        out = pl.pallas_call(
            kernel,
            out_shape=jax.ShapeDtypeStruct((rows, 1), x.dtype),
            grid=(n_row_blocks,),
            in_specs=[pl.BlockSpec((block_rows, hw), lambda i: (i, 0))],
            out_specs=pl.BlockSpec((block_rows, 1), lambda i: (i, 0)),
            compiler_params=pltpu.CompilerParams(
                dimension_semantics=("parallel",), **compiler_params_kw),
        )(xf)
    else:
        # Huge-H*W path: stream spatial tiles with lane-wide f32 partial accumulators.
        n_hw_tiles = pl.cdiv(hw, hw_tile)
        mask_last = (hw % hw_tile) != 0
        kernel = functools.partial(_hpp_tiled_kernel, use_avg=use_avg_pool,
                                   use_max=use_max_pool, hw=hw, hw_tile=hw_tile,
                                   mask_last=mask_last)
        scratch = []
        if use_avg_pool:
            scratch.append(pltpu.VMEM((block_rows, 128), jnp.float32))   # sum partials
        if use_max_pool:
            scratch.append(pltpu.VMEM((block_rows, 128), jnp.float32))   # max partials
        out = pl.pallas_call(
            kernel,
            out_shape=jax.ShapeDtypeStruct((rows, 1), x.dtype),
            grid=(n_row_blocks, n_hw_tiles),
            in_specs=[pl.BlockSpec((block_rows, hw_tile), lambda i, j: (i, j))],
            out_specs=pl.BlockSpec((block_rows, 1), lambda i, j: (i, 0)),
            scratch_shapes=scratch,
            compiler_params=pltpu.CompilerParams(
                dimension_semantics=("parallel", "arbitrary"), **compiler_params_kw),
        )(xf)

    return out.reshape(N, C, 1, 1)


# ------------------------------------------------------------------------------- main ---
if __name__ == "__main__":
    key = jax.random.PRNGKey(0)
    k0, k1 = jax.random.split(key)

    # Default module config: use_avg_pool=True, use_max_pool=False.
    x = jax.random.normal(k0, (2, 4, 16, 16), dtype=jnp.float32)
    ref_avg = jnp.mean(x, axis=(2, 3), keepdims=True)
    ref_max = jnp.max(x, axis=(2, 3), keepdims=True)

    y = horizontal_pyramid_pooling(x, use_avg_pool=True, use_max_pool=False)
    jax.block_until_ready(y)
    assert y.shape == (2, 4, 1, 1)
    assert jnp.allclose(y, ref_avg, atol=1e-5, rtol=1e-5)

    y_max = horizontal_pyramid_pooling(x, use_avg_pool=False, use_max_pool=True)
    jax.block_until_ready(y_max)
    assert jnp.allclose(y_max, ref_max, atol=1e-5, rtol=1e-5)

    y_both = horizontal_pyramid_pooling(x, use_avg_pool=True, use_max_pool=True)
    jax.block_until_ready(y_both)
    assert jnp.allclose(y_both, ref_avg + ref_max, atol=1e-5, rtol=1e-5)

    # Larger spatial input: fast path with >=2 row blocks (megacore split).
    x2 = jax.random.normal(k1, (2, 8, 70, 70), dtype=jnp.float32)
    ref2_avg = jnp.mean(x2, axis=(2, 3), keepdims=True)
    ref2_max = jnp.max(x2, axis=(2, 3), keepdims=True)
    y2 = horizontal_pyramid_pooling(x2, use_avg_pool=True, use_max_pool=True)
    jax.block_until_ready(y2)
    assert y2.shape == (2, 8, 1, 1)
    assert jnp.allclose(y2, ref2_avg + ref2_max, atol=1e-5, rtol=1e-5)

    # Exercise the tiled fallback path (masked tail + lane-wide accumulators) by shrinking
    # the tiling knobs so the same small input is forced through the 2-D grid.
    y3 = horizontal_pyramid_pooling(x2, use_avg_pool=True, use_max_pool=True,
                                    per_buffer_bytes=128 * 1024, max_hw_tile=1024)
    jax.block_until_ready(y3)
    assert jnp.allclose(y3, ref2_avg + ref2_max, atol=1e-5, rtol=1e-5)

    y4 = horizontal_pyramid_pooling(x2, use_avg_pool=True, use_max_pool=False,
                                    per_buffer_bytes=128 * 1024, max_hw_tile=1024)
    jax.block_until_ready(y4)
    assert jnp.allclose(y4, ref2_avg, atol=1e-5, rtol=1e-5)

    print("KERNEL_OK")
</pallas_src>

<mosaic_0001>
module attributes {stable_mosaic.version = 11 : i64} {
  func.func @_hpp_single_kernel(%arg0: i32, %arg1: memref<8x256xf32, #tpu.memory_space<vmem>>, %arg2: memref<8x1xf32, #tpu.memory_space<vmem>>) attributes {dimension_semantics = [#tpu.dimension_semantics<parallel>], iteration_bounds = array<i64: 1>, scalar_prefetch = 0 : i64, scratch_operands = 0 : i64, tpu.core_type = #tpu.core_type<tc>, window_params = [{transform_indices = @transform_0, window_bounds = array<i64: 8, 256>}, {transform_indices = @transform_1, window_bounds = array<i64: 8, 1>}]} {
    %c0 = arith.constant 0 : index
    %c0_0 = arith.constant 0 : index
    %0 = vector.load %arg1[%c0, %c0_0] : memref<8x256xf32, #tpu.memory_space<vmem>>, vector<8x256xf32>
    %cst = arith.constant dense<0.000000e+00> : vector<8xf32>
    %1 = vector.multi_reduction <add>, %0, %cst [1] : vector<8x256xf32> to vector<8xf32>
    %2 = vector.shape_cast %1 : vector<8xf32> to vector<8x1xf32>
    %cst_1 = arith.constant 3.906250e-03 : f32
    %3 = vector.broadcast %cst_1 : f32 to vector<8x1xf32>
    %4 = arith.mulf %2, %3 : vector<8x1xf32>
    %c0_2 = arith.constant 0 : index
    %c0_3 = arith.constant 0 : index
    %5 = vector.load %arg2[%c0_2, %c0_3] : memref<8x1xf32, #tpu.memory_space<vmem>>, vector<8x1xf32>
    tpu.vector_store %arg2[%c0_2, %c0_3], %4 {strides = array<i32>} : memref<8x1xf32, #tpu.memory_space<vmem>>, vector<8x1xf32>,
    return
  }
  func.func @transform_0(%arg0: i32) -> (i32, i32) {
    %c0_i32 = arith.constant 0 : i32
    %c0_i32_0 = arith.constant 0 : i32
    return %arg0, %c0_i32 : i32, i32
  }
  func.func @transform_1(%arg0: i32) -> (i32, i32) {
    %c0_i32 = arith.constant 0 : i32
    %c0_i32_0 = arith.constant 0 : i32
    return %arg0, %c0_i32 : i32, i32
  }
}

</mosaic_0001>

<bundles_post_ra>
// kernel: tpu_custom_call.1
= control target key start
LH: loop header
LB: loop body
LE: loop exit
PB: predicated region body
PF: predicated region fallthrough
CT: control target
= control target key end

     0   :  { %6 = vsyncpa [#allocation3], 0  ;;  %s62_s9 = smov [#allocation2]   ;;  %s79_s0 = inlined_call_operand.hbm [shape: f32[8,256], index: 0, kind: input, shape index: {}]   ;;  %s80_s1 = inlined_call_operand.vmem [shape: f32[8,1], index: 1, kind: output, shape index: {}]  }
   0x1   :  { %s12_s8 = sshll.u32 %s79_s0, 4  ;;  %s14_s10 = sshll.u32 %s62_s9, 4  ;;  %s13_s8 = int_to_ptr.hbm [resolvable:$true] %s12_s8  ;;  %s15_s10 = int_to_ptr.vmem [resolvable:$true] %s14_s10 }
   0x2   :  { %17 = dma.hbm_to_vmem [thread:$0]  %s13_s8, 256, %s15_s10, [#allocation3]  }
   0x3   :  { %60 = dma.done.wait [#allocation3], 256  }
   0x4   :  { %61 = vsyncadd [#allocation3], 4294967040  ;;  %v22_v0 = vld [vmem:[#allocation2] sm:$0xff]  ;;  %v23_v1 = vld [vmem:[#allocation2 + $0x8] sm:$0xff]  ;;  %vm28_vm0 = vcmask 7168  }
   0x5   :  { %v24_v2 = vadd.f32 %v23_v1, %v22_v0 }
   0x7   :  { %25 = vadd.xlane.f32.xlu0 %v24_v2 }
  0x7a   :  { %v26_v3 = vpop.xlane.xlu0 %25 }
  0x7b   :  { %v27_v4 = vmul.f32 0.00390625, %v26_v3 }
  0x7d   :  { %29 = vst.msk [vmem:[%s80_s1] sm:$0xff] %vm28_vm0, %v27_v4 }
  0x7e   :  { %34 = vsyncpa [#allocation3], 1 }

</bundles_post_ra>
